<compile_context>
chip_gen: v7x
topology: tpu7x:2x2x1
jax: 0.10.0
libtpu: 0.0.40
codegen_flags: <defaults>
</compile_context>

<pallas_src>
import functools

import jax
import jax.numpy as jnp
from jax import lax
from jax.experimental import pallas as pl
from jax.experimental.pallas import tpu as pltpu


_VMEM_LIMIT_BYTES = 32 * 1024 * 1024      # >= scoped default on v5e (16M) / v6e / v7x (32M)
_VMEM_TILE_BUDGET = 22 * 1024 * 1024      # per-step footprint target, leaves headroom
_MAX_TILE = 32768                          # hard cap on edges per grid step


def _baseline_kernel(x_ref, w0_ref, b0_ref, wh_ref, bh_ref, w4_ref, b4_ref,
                     o_ref, *, natural_layout):
    x = x_ref[...]                                            # f32

    if natural_layout:
        # x: [tile_n, E] (natural layout, edges on sublanes).  Contract the
        # feature axis of both operands -> lane-dense [H, tile_n]; Mosaic
        # performs the small VMEM-local transpose of x as part of the matmul.
        h = lax.dot_general(
            w0_ref[...], x,
            dimension_numbers=(((1,), (1,)), ((), ())),
            preferred_element_type=jnp.float32)
    else:
        # Fallback layout: x is already [E, tile_n] (feature-major).
        h = jnp.dot(w0_ref[...], x, preferred_element_type=jnp.float32)
    h = h + b0_ref[...]                                       # edge_proj (no activation)

    # fully_connected_1..3 + ReLU: bf16 MXU operands, f32 accumulation,
    # bias / ReLU in f32.  Statically unrolled over the stacked weights.
    for k in range(wh_ref.shape[0]):
        hb = h.astype(jnp.bfloat16)
        h = jnp.dot(wh_ref[k], hb, preferred_element_type=jnp.float32) + bh_ref[k]
        h = jnp.maximum(h, 0.0)

    # fully_connected_4 + sigmoid on the VPU/XLU (multiply + sublane reduce):
    # the result is already a lane-dense [1, tile_n] row.
    z = jnp.sum(h * w4_ref[...], axis=0, keepdims=True) + b4_ref[...]
    o_ref[...] = jax.nn.sigmoid(z).astype(o_ref.dtype)


def _vmem_bytes_per_edge(hidden, e, natural_layout):
    """Rough per-edge VMEM footprint of one grid step (used to size tiles)."""
    if natural_layout:
        inp = 2 * 128 * 4          # double-buffered (tile_n, E) block; the E-wide
                                   # minor dim is lane-padded to 128 in VMEM
        xpose = e * 4              # VMEM-local [E, tile_n] transpose temp
    else:
        inp = 2 * e * 4            # double-buffered (E, tile_n) lane-dense block
        xpose = 0
    acts = 3 * hidden * 4 + 2 * hidden * 2   # ~3 live f32 + 2 bf16 [H, tile_n] values
    outp = 2 * 8 * 4                          # (1, tile_n) output block, sublane-padded
    return inp + xpose + acts + outp


def _pick_tile(n, hidden, e, natural_layout, max_tile):
    """Largest lane-aligned tile under the VMEM budget, split evenly over the grid."""
    cap = (_VMEM_TILE_BUDGET // _vmem_bytes_per_edge(hidden, e, natural_layout)) // 128 * 128
    cap = max(128, min(_MAX_TILE, cap))
    if max_tile is not None:
        cap = max(128, min(cap, int(max_tile)))
    # >=2 equal grid steps when there is enough work, so v7x's two TensorCores
    # (dimension_semantics=("parallel",)) get balanced shards instead of one
    # full tile + one tiny ragged remainder.
    steps = max(pl.cdiv(n, cap), 2 if n > 128 else 1)
    return max(128, pl.cdiv(pl.cdiv(n, steps), 128) * 128)


def _forward_impl(edge_attr, params, *, natural_layout, max_tile=None):
    n, e = edge_attr.shape
    hidden = params["w0"].shape[0]
    n_hidden = params["wh"].shape[0]

    tile_n = _pick_tile(n, hidden, e, natural_layout, max_tile)
    grid = pl.cdiv(n, tile_n)

    if natural_layout:
        x_in = edge_attr                                           # [N, E]
        x_spec = pl.BlockSpec((tile_n, e), lambda i: (i, 0))
    else:
        x_in = edge_attr.T                                         # [E, N] (fallback only)
        x_spec = pl.BlockSpec((e, tile_n), lambda i: (0, i))

    full = lambda shape: pl.BlockSpec(shape, lambda i: (0,) * len(shape))

    flops = 2 * n * (e * hidden + n_hidden * hidden * hidden + hidden)
    weight_bytes = (4 * (hidden * e + hidden)              # edge_proj (f32)
                    + 2 * n_hidden * hidden * hidden       # hidden weights (bf16)
                    + 4 * n_hidden * hidden                # hidden biases (f32)
                    + 4 * (hidden + 1))                    # final layer
    cost = pl.CostEstimate(flops=flops,
                           transcendentals=2 * n,          # sigmoid ~ exp + reciprocal
                           bytes_accessed=4 * n * (e + 1) + weight_bytes)

    out = pl.pallas_call(
        functools.partial(_baseline_kernel, natural_layout=natural_layout),
        out_shape=jax.ShapeDtypeStruct((1, n), jnp.float32),
        grid_spec=pltpu.PrefetchScalarGridSpec(
            num_scalar_prefetch=0,
            grid=(grid,),
            in_specs=[
                x_spec,                                            # edge_attr tile
                full((hidden, e)), full((hidden, 1)),              # edge_proj  W, b (f32)
                full((n_hidden, hidden, hidden)),                  # fc1..fc3   W (bf16, stacked)
                full((n_hidden, hidden, 1)),                       # fc1..fc3   b (f32, stacked)
                full((hidden, 1)), full((1, 1)),                   # fc4        W^T, b (f32)
            ],
            out_specs=pl.BlockSpec((1, tile_n), lambda i: (0, i)),
        ),
        compiler_params=pltpu.CompilerParams(
            dimension_semantics=("parallel",),
            vmem_limit_bytes=_VMEM_LIMIT_BYTES),
        cost_estimate=cost,
    )(x_in,
      params["w0"], params["b0"],
      params["wh"], params["bh"],
      params["w4"], params["b4"])

    return out.reshape(n, 1)


def baseline_forward(edge_attr, params, *, max_tile=None):
    """edge_attr: [num_edges, edge_attr_size] f32  ->  [num_edges, 1] f32."""
    # Primary path: natural [N, E] input layout, transpose folded into the first
    # matmul inside the kernel (no standalone HBM transpose pass).  Pallas/Mosaic
    # compile errors are raised synchronously at dispatch; if this version cannot
    # lower the K-minor contraction, fall back to the proven single-transpose layout.
    try:
        return _forward_impl(edge_attr, params, natural_layout=True, max_tile=max_tile)
    except Exception:
        return _forward_impl(edge_attr, params, natural_layout=False, max_tile=max_tile)


def init_params(key, edge_attr_size, hidden_size, n_hidden=3):
    """Mimics torch.nn.Linear default init (U[-1/sqrt(fan_in), +1/sqrt(fan_in)]).
    Weights kept in PyTorch [out_features, in_features] orientation.  The three
    hidden layers are stacked into single operands; their weights are stored in
    bf16 (MXU operands), everything else stays f32.  The final layer's weight is
    stored pre-transposed as a [hidden, 1] column for the VPU reduce."""
    def linear(k, fan_in, fan_out):
        kw, kb = jax.random.split(k)
        bound = 1.0 / jnp.sqrt(fan_in)
        w = jax.random.uniform(kw, (fan_out, fan_in), jnp.float32, -bound, bound)
        b = jax.random.uniform(kb, (fan_out, 1), jnp.float32, -bound, bound)
        return w, b

    keys = jax.random.split(key, n_hidden + 2)
    w0, b0 = linear(keys[0], edge_attr_size, hidden_size)
    wh, bh = zip(*(linear(keys[1 + k], hidden_size, hidden_size) for k in range(n_hidden)))
    w4, b4 = linear(keys[n_hidden + 1], hidden_size, 1)
    return {
        "w0": w0, "b0": b0,                                # [H,E], [H,1]  f32
        "wh": jnp.stack(wh).astype(jnp.bfloat16),          # [L,H,H]       bf16
        "bh": jnp.stack(bh),                               # [L,H,1]       f32
        "w4": w4.T, "b4": b4,                              # [H,1], [1,1]  f32
    }


def reference_forward(edge_attr, params):
    """Pure-JAX f32 reference using the same (bf16-rounded) hidden weights, so the
    comparison isolates the kernel's bf16 activation rounding only."""
    a = edge_attr @ params["w0"].T + params["b0"].T
    for k in range(params["wh"].shape[0]):
        w = params["wh"][k].astype(jnp.float32)
        a = jnp.maximum(a @ w.T + params["bh"][k].T, 0.0)
    z = a @ params["w4"] + params["b4"].T
    return jax.nn.sigmoid(z)


if __name__ == "__main__":
    edge_attr_size = 8
    hidden_size = 32
    num_edges = 200   # not a multiple of 128 -> exercises the ragged last block

    key = jax.random.PRNGKey(0)
    k_x, k_p = jax.random.split(key)
    edge_attr = jax.random.normal(k_x, (num_edges, edge_attr_size), jnp.float32)
    params = init_params(k_p, edge_attr_size, hidden_size)

    out = jax.block_until_ready(baseline_forward(edge_attr, params))
    ref = reference_forward(edge_attr, params)

    assert out.shape == (num_edges, 1), out.shape
    # Hidden layers use bf16 MXU operands with f32 accumulation; vs. the f32
    # reference (same rounded weights) the error is activation rounding only.
    assert jnp.allclose(out, ref, atol=1e-2, rtol=1e-2), "mismatch vs reference"

    print("KERNEL_OK")
</pallas_src>

<mosaic_0001>
module attributes {stable_mosaic.version = 11 : i64} {
  func.func @_baseline_kernel(%arg0: i32, %arg1: memref<128x8xf32, #tpu.memory_space<vmem>>, %arg2: memref<32x8xf32, #tpu.memory_space<vmem>>, %arg3: memref<32x1xf32, #tpu.memory_space<vmem>>, %arg4: memref<3x32x32xbf16, #tpu.memory_space<vmem>>, %arg5: memref<3x32x1xf32, #tpu.memory_space<vmem>>, %arg6: memref<32x1xf32, #tpu.memory_space<vmem>>, %arg7: memref<1x1xf32, #tpu.memory_space<vmem>>, %arg8: memref<1x128xf32, #tpu.memory_space<vmem>>) attributes {dimension_semantics = [#tpu.dimension_semantics<parallel>], iteration_bounds = array<i64: 2>, scalar_prefetch = 0 : i64, scratch_operands = 0 : i64, tpu.core_type = #tpu.core_type<tc>, window_params = [{transform_indices = @transform_0, window_bounds = array<i64: 128, 8>}, {pipeline_mode = #tpu.pipeline_mode<synchronous>, transform_indices = @transform_1, window_bounds = array<i64: 32, 8>}, {pipeline_mode = #tpu.pipeline_mode<synchronous>, transform_indices = @transform_2, window_bounds = array<i64: 32, 1>}, {pipeline_mode = #tpu.pipeline_mode<synchronous>, transform_indices = @transform_3, window_bounds = array<i64: 3, 32, 32>}, {pipeline_mode = #tpu.pipeline_mode<synchronous>, transform_indices = @transform_4, window_bounds = array<i64: 3, 32, 1>}, {pipeline_mode = #tpu.pipeline_mode<synchronous>, transform_indices = @transform_5, window_bounds = array<i64: 32, 1>}, {pipeline_mode = #tpu.pipeline_mode<synchronous>, transform_indices = @transform_6, window_bounds = array<i64: 1, 1>}, {transform_indices = @transform_7, window_bounds = array<i64: 1, 128>}]} {
    %c0 = arith.constant 0 : index
    %c0_0 = arith.constant 0 : index
    %0 = vector.load %arg1[%c0, %c0_0] : memref<128x8xf32, #tpu.memory_space<vmem>>, vector<128x8xf32>
    %c0_1 = arith.constant 0 : index
    %c0_2 = arith.constant 0 : index
    %1 = vector.load %arg2[%c0_1, %c0_2] : memref<32x8xf32, #tpu.memory_space<vmem>>, vector<32x8xf32>
    %cst = arith.constant dense<0.000000e+00> : vector<32x128xf32>
    %2 = tpu.matmul %1, %0, %cst {dimension_numbers = #tpu.dot_dimension_numbers<[1], [1], [0], [0], [0, 0, 1, 0], [], []>} : vector<32x8xf32>, vector<128x8xf32>, vector<32x128xf32> -> vector<32x128xf32>
    %c0_3 = arith.constant 0 : index
    %c0_4 = arith.constant 0 : index
    %3 = vector.load %arg3[%c0_3, %c0_4] : memref<32x1xf32, #tpu.memory_space<vmem>>, vector<32x1xf32>
    %4 = vector.broadcast %3 : vector<32x1xf32> to vector<32x128xf32>
    %5 = arith.addf %2, %4 : vector<32x128xf32>
    %6 = arith.truncf %5 : vector<32x128xf32> to vector<32x128xbf16>
    %c0_5 = arith.constant 0 : index
    %c0_6 = arith.constant 0 : index
    %c0_7 = arith.constant 0 : index
    %7 = vector.load %arg4[%c0_5, %c0_6, %c0_7] : memref<3x32x32xbf16, #tpu.memory_space<vmem>>, vector<1x32x32xbf16>
    %8 = vector.shape_cast %7 : vector<1x32x32xbf16> to vector<32x32xbf16>
    %cst_8 = arith.constant dense<0.000000e+00> : vector<32x128xf32>
    %9 = tpu.matmul %8, %6, %cst_8 {dimension_numbers = #tpu.dot_dimension_numbers<[1], [0], [0], [1], [0, 0, 1, 1], [], []>} : vector<32x32xbf16>, vector<32x128xbf16>, vector<32x128xf32> -> vector<32x128xf32>
    %c0_9 = arith.constant 0 : index
    %c0_10 = arith.constant 0 : index
    %c0_11 = arith.constant 0 : index
    %10 = vector.load %arg5[%c0_9, %c0_10, %c0_11] : memref<3x32x1xf32, #tpu.memory_space<vmem>>, vector<1x32x1xf32>
    %11 = vector.shape_cast %10 : vector<1x32x1xf32> to vector<32x1xf32>
    %12 = vector.broadcast %11 : vector<32x1xf32> to vector<32x128xf32>
    %13 = arith.addf %9, %12 : vector<32x128xf32>
    %cst_12 = arith.constant 0.000000e+00 : f32
    %14 = vector.broadcast %cst_12 : f32 to vector<32x128xf32>
    %15 = arith.maximumf %13, %14 : vector<32x128xf32>
    %16 = arith.truncf %15 : vector<32x128xf32> to vector<32x128xbf16>
    %c1 = arith.constant 1 : index
    %c0_13 = arith.constant 0 : index
    %c0_14 = arith.constant 0 : index
    %17 = vector.load %arg4[%c1, %c0_13, %c0_14] : memref<3x32x32xbf16, #tpu.memory_space<vmem>>, vector<1x32x32xbf16>
    %18 = vector.shape_cast %17 : vector<1x32x32xbf16> to vector<32x32xbf16>
    %cst_15 = arith.constant dense<0.000000e+00> : vector<32x128xf32>
    %19 = tpu.matmul %18, %16, %cst_15 {dimension_numbers = #tpu.dot_dimension_numbers<[1], [0], [0], [1], [0, 0, 1, 1], [], []>} : vector<32x32xbf16>, vector<32x128xbf16>, vector<32x128xf32> -> vector<32x128xf32>
    %c1_16 = arith.constant 1 : index
    %c0_17 = arith.constant 0 : index
    %c0_18 = arith.constant 0 : index
    %20 = vector.load %arg5[%c1_16, %c0_17, %c0_18] : memref<3x32x1xf32, #tpu.memory_space<vmem>>, vector<1x32x1xf32>
    %21 = vector.shape_cast %20 : vector<1x32x1xf32> to vector<32x1xf32>
    %22 = vector.broadcast %21 : vector<32x1xf32> to vector<32x128xf32>
    %23 = arith.addf %19, %22 : vector<32x128xf32>
    %cst_19 = arith.constant 0.000000e+00 : f32
    %24 = vector.broadcast %cst_19 : f32 to vector<32x128xf32>
    %25 = arith.maximumf %23, %24 : vector<32x128xf32>
    %26 = arith.truncf %25 : vector<32x128xf32> to vector<32x128xbf16>
    %c2 = arith.constant 2 : index
    %c0_20 = arith.constant 0 : index
    %c0_21 = arith.constant 0 : index
    %27 = vector.load %arg4[%c2, %c0_20, %c0_21] : memref<3x32x32xbf16, #tpu.memory_space<vmem>>, vector<1x32x32xbf16>
    %28 = vector.shape_cast %27 : vector<1x32x32xbf16> to vector<32x32xbf16>
    %cst_22 = arith.constant dense<0.000000e+00> : vector<32x128xf32>
    %29 = tpu.matmul %28, %26, %cst_22 {dimension_numbers = #tpu.dot_dimension_numbers<[1], [0], [0], [1], [0, 0, 1, 1], [], []>} : vector<32x32xbf16>, vector<32x128xbf16>, vector<32x128xf32> -> vector<32x128xf32>
    %c2_23 = arith.constant 2 : index
    %c0_24 = arith.constant 0 : index
    %c0_25 = arith.constant 0 : index
    %30 = vector.load %arg5[%c2_23, %c0_24, %c0_25] : memref<3x32x1xf32, #tpu.memory_space<vmem>>, vector<1x32x1xf32>
    %31 = vector.shape_cast %30 : vector<1x32x1xf32> to vector<32x1xf32>
    %32 = vector.broadcast %31 : vector<32x1xf32> to vector<32x128xf32>
    %33 = arith.addf %29, %32 : vector<32x128xf32>
    %cst_26 = arith.constant 0.000000e+00 : f32
    %34 = vector.broadcast %cst_26 : f32 to vector<32x128xf32>
    %35 = arith.maximumf %33, %34 : vector<32x128xf32>
    %c0_27 = arith.constant 0 : index
    %c0_28 = arith.constant 0 : index
    %36 = vector.load %arg6[%c0_27, %c0_28] : memref<32x1xf32, #tpu.memory_space<vmem>>, vector<32x1xf32>
    %37 = vector.broadcast %36 : vector<32x1xf32> to vector<32x128xf32>
    %38 = arith.mulf %35, %37 : vector<32x128xf32>
    %cst_29 = arith.constant dense<0.000000e+00> : vector<128xf32>
    %39 = vector.multi_reduction <add>, %38, %cst_29 [0] : vector<32x128xf32> to vector<128xf32>
    %40 = vector.shape_cast %39 : vector<128xf32> to vector<1x128xf32>
    %c0_30 = arith.constant 0 : index
    %c0_31 = arith.constant 0 : index
    %41 = vector.load %arg7[%c0_30, %c0_31] : memref<1x1xf32, #tpu.memory_space<vmem>>, vector<1x1xf32>
    %42 = vector.broadcast %41 : vector<1x1xf32> to vector<1x128xf32>
    %43 = arith.addf %40, %42 : vector<1x128xf32>
    %44 = arith.negf %43 : vector<1x128xf32>
    %45 = math.exp %44 : vector<1x128xf32>
    %cst_32 = arith.constant 1.000000e+00 : f32
    %46 = vector.broadcast %cst_32 : f32 to vector<1x128xf32>
    %47 = arith.addf %46, %45 : vector<1x128xf32>
    %48 = arith.divf %46, %47 : vector<1x128xf32>
    %c0_33 = arith.constant 0 : index
    %c0_34 = arith.constant 0 : index
    %49 = vector.load %arg8[%c0_33, %c0_34] : memref<1x128xf32, #tpu.memory_space<vmem>>, vector<1x128xf32>
    tpu.vector_store %arg8[%c0_33, %c0_34], %48 {strides = array<i32>} : memref<1x128xf32, #tpu.memory_space<vmem>>, vector<1x128xf32>,
    return
  }
  func.func @transform_0(%arg0: i32) -> (i32, i32) {
    %c0_i32 = arith.constant 0 : i32
    %c0_i32_0 = arith.constant 0 : i32
    return %arg0, %c0_i32 : i32, i32
  }
  func.func @transform_1(%arg0: i32) -> (i32, i32) {
    %c0_i32 = arith.constant 0 : i32
    %c0_i32_0 = arith.constant 0 : i32
    %c0_i32_1 = arith.constant 0 : i32
    return %c0_i32, %c0_i32_0 : i32, i32
  }
  func.func @transform_2(%arg0: i32) -> (i32, i32) {
    %c0_i32 = arith.constant 0 : i32
    %c0_i32_0 = arith.constant 0 : i32
    %c0_i32_1 = arith.constant 0 : i32
    return %c0_i32, %c0_i32_0 : i32, i32
  }
  func.func @transform_3(%arg0: i32) -> (i32, i32, i32) {
    %c0_i32 = arith.constant 0 : i32
    %c0_i32_0 = arith.constant 0 : i32
    %c0_i32_1 = arith.constant 0 : i32
    %c0_i32_2 = arith.constant 0 : i32
    return %c0_i32, %c0_i32_0, %c0_i32_1 : i32, i32, i32
  }
  func.func @transform_4(%arg0: i32) -> (i32, i32, i32) {
    %c0_i32 = arith.constant 0 : i32
    %c0_i32_0 = arith.constant 0 : i32
    %c0_i32_1 = arith.constant 0 : i32
    %c0_i32_2 = arith.constant 0 : i32
    return %c0_i32, %c0_i32_0, %c0_i32_1 : i32, i32, i32
  }
  func.func @transform_5(%arg0: i32) -> (i32, i32) {
    %c0_i32 = arith.constant 0 : i32
    %c0_i32_0 = arith.constant 0 : i32
    %c0_i32_1 = arith.constant 0 : i32
    return %c0_i32, %c0_i32_0 : i32, i32
  }
  func.func @transform_6(%arg0: i32) -> (i32, i32) {
    %c0_i32 = arith.constant 0 : i32
    %c0_i32_0 = arith.constant 0 : i32
    %c0_i32_1 = arith.constant 0 : i32
    return %c0_i32, %c0_i32_0 : i32, i32
  }
  func.func @transform_7(%arg0: i32) -> (i32, i32) {
    %c0_i32 = arith.constant 0 : i32
    %c0_i32_0 = arith.constant 0 : i32
    return %c0_i32, %arg0 : i32, i32
  }
}

module attributes {stable_mosaic.version = 11 : i64} {
  func.func @_baseline_kernel(%arg0: i32, %arg1: memref<8x128xf32, #tpu.memory_space<vmem>>, %arg2: memref<32x8xf32, #tpu.memory_space<vmem>>, %arg3: memref<32x1xf32, #tpu.memory_space<vmem>>, %arg4: memref<3x32x32xbf16, #tpu.memory_space<vmem>>, %arg5: memref<3x32x1xf32, #tpu.memory_space<vmem>>, %arg6: memref<32x1xf32, #tpu.memory_space<vmem>>, %arg7: memref<1x1xf32, #tpu.memory_space<vmem>>, %arg8: memref<1x128xf32, #tpu.memory_space<vmem>>) attributes {dimension_semantics = [#tpu.dimension_semantics<parallel>], iteration_bounds = array<i64: 2>, scalar_prefetch = 0 : i64, scratch_operands = 0 : i64, tpu.core_type = #tpu.core_type<tc>, window_params = [{transform_indices = @transform_0, window_bounds = array<i64: 8, 128>}, {pipeline_mode = #tpu.pipeline_mode<synchronous>, transform_indices = @transform_1, window_bounds = array<i64: 32, 8>}, {pipeline_mode = #tpu.pipeline_mode<synchronous>, transform_indices = @transform_2, window_bounds = array<i64: 32, 1>}, {pipeline_mode = #tpu.pipeline_mode<synchronous>, transform_indices = @transform_3, window_bounds = array<i64: 3, 32, 32>}, {pipeline_mode = #tpu.pipeline_mode<synchronous>, transform_indices = @transform_4, window_bounds = array<i64: 3, 32, 1>}, {pipeline_mode = #tpu.pipeline_mode<synchronous>, transform_indices = @transform_5, window_bounds = array<i64: 32, 1>}, {pipeline_mode = #tpu.pipeline_mode<synchronous>, transform_indices = @transform_6, window_bounds = array<i64: 1, 1>}, {transform_indices = @transform_7, window_bounds = array<i64: 1, 128>}]} {
    %c0 = arith.constant 0 : index
    %c0_0 = arith.constant 0 : index
    %0 = vector.load %arg1[%c0, %c0_0] : memref<8x128xf32, #tpu.memory_space<vmem>>, vector<8x128xf32>
    %c0_1 = arith.constant 0 : index
    %c0_2 = arith.constant 0 : index
    %1 = vector.load %arg2[%c0_1, %c0_2] : memref<32x8xf32, #tpu.memory_space<vmem>>, vector<32x8xf32>
    %cst = arith.constant dense<0.000000e+00> : vector<32x128xf32>
    %2 = tpu.matmul %1, %0, %cst {dimension_numbers = #tpu.dot_dimension_numbers<[1], [0], [0], [1], [0, 0, 1, 1], [], []>} : vector<32x8xf32>, vector<8x128xf32>, vector<32x128xf32> -> vector<32x128xf32>
    %c0_3 = arith.constant 0 : index
    %c0_4 = arith.constant 0 : index
    %3 = vector.load %arg3[%c0_3, %c0_4] : memref<32x1xf32, #tpu.memory_space<vmem>>, vector<32x1xf32>
    %4 = vector.broadcast %3 : vector<32x1xf32> to vector<32x128xf32>
    %5 = arith.addf %2, %4 : vector<32x128xf32>
    %6 = arith.truncf %5 : vector<32x128xf32> to vector<32x128xbf16>
    %c0_5 = arith.constant 0 : index
    %c0_6 = arith.constant 0 : index
    %c0_7 = arith.constant 0 : index
    %7 = vector.load %arg4[%c0_5, %c0_6, %c0_7] : memref<3x32x32xbf16, #tpu.memory_space<vmem>>, vector<1x32x32xbf16>
    %8 = vector.shape_cast %7 : vector<1x32x32xbf16> to vector<32x32xbf16>
    %cst_8 = arith.constant dense<0.000000e+00> : vector<32x128xf32>
    %9 = tpu.matmul %8, %6, %cst_8 {dimension_numbers = #tpu.dot_dimension_numbers<[1], [0], [0], [1], [0, 0, 1, 1], [], []>} : vector<32x32xbf16>, vector<32x128xbf16>, vector<32x128xf32> -> vector<32x128xf32>
    %c0_9 = arith.constant 0 : index
    %c0_10 = arith.constant 0 : index
    %c0_11 = arith.constant 0 : index
    %10 = vector.load %arg5[%c0_9, %c0_10, %c0_11] : memref<3x32x1xf32, #tpu.memory_space<vmem>>, vector<1x32x1xf32>
    %11 = vector.shape_cast %10 : vector<1x32x1xf32> to vector<32x1xf32>
    %12 = vector.broadcast %11 : vector<32x1xf32> to vector<32x128xf32>
    %13 = arith.addf %9, %12 : vector<32x128xf32>
    %cst_12 = arith.constant 0.000000e+00 : f32
    %14 = vector.broadcast %cst_12 : f32 to vector<32x128xf32>
    %15 = arith.maximumf %13, %14 : vector<32x128xf32>
    %16 = arith.truncf %15 : vector<32x128xf32> to vector<32x128xbf16>
    %c1 = arith.constant 1 : index
    %c0_13 = arith.constant 0 : index
    %c0_14 = arith.constant 0 : index
    %17 = vector.load %arg4[%c1, %c0_13, %c0_14] : memref<3x32x32xbf16, #tpu.memory_space<vmem>>, vector<1x32x32xbf16>
    %18 = vector.shape_cast %17 : vector<1x32x32xbf16> to vector<32x32xbf16>
    %cst_15 = arith.constant dense<0.000000e+00> : vector<32x128xf32>
    %19 = tpu.matmul %18, %16, %cst_15 {dimension_numbers = #tpu.dot_dimension_numbers<[1], [0], [0], [1], [0, 0, 1, 1], [], []>} : vector<32x32xbf16>, vector<32x128xbf16>, vector<32x128xf32> -> vector<32x128xf32>
    %c1_16 = arith.constant 1 : index
    %c0_17 = arith.constant 0 : index
    %c0_18 = arith.constant 0 : index
    %20 = vector.load %arg5[%c1_16, %c0_17, %c0_18] : memref<3x32x1xf32, #tpu.memory_space<vmem>>, vector<1x32x1xf32>
    %21 = vector.shape_cast %20 : vector<1x32x1xf32> to vector<32x1xf32>
    %22 = vector.broadcast %21 : vector<32x1xf32> to vector<32x128xf32>
    %23 = arith.addf %19, %22 : vector<32x128xf32>
    %cst_19 = arith.constant 0.000000e+00 : f32
    %24 = vector.broadcast %cst_19 : f32 to vector<32x128xf32>
    %25 = arith.maximumf %23, %24 : vector<32x128xf32>
    %26 = arith.truncf %25 : vector<32x128xf32> to vector<32x128xbf16>
    %c2 = arith.constant 2 : index
    %c0_20 = arith.constant 0 : index
    %c0_21 = arith.constant 0 : index
    %27 = vector.load %arg4[%c2, %c0_20, %c0_21] : memref<3x32x32xbf16, #tpu.memory_space<vmem>>, vector<1x32x32xbf16>
    %28 = vector.shape_cast %27 : vector<1x32x32xbf16> to vector<32x32xbf16>
    %cst_22 = arith.constant dense<0.000000e+00> : vector<32x128xf32>
    %29 = tpu.matmul %28, %26, %cst_22 {dimension_numbers = #tpu.dot_dimension_numbers<[1], [0], [0], [1], [0, 0, 1, 1], [], []>} : vector<32x32xbf16>, vector<32x128xbf16>, vector<32x128xf32> -> vector<32x128xf32>
    %c2_23 = arith.constant 2 : index
    %c0_24 = arith.constant 0 : index
    %c0_25 = arith.constant 0 : index
    %30 = vector.load %arg5[%c2_23, %c0_24, %c0_25] : memref<3x32x1xf32, #tpu.memory_space<vmem>>, vector<1x32x1xf32>
    %31 = vector.shape_cast %30 : vector<1x32x1xf32> to vector<32x1xf32>
    %32 = vector.broadcast %31 : vector<32x1xf32> to vector<32x128xf32>
    %33 = arith.addf %29, %32 : vector<32x128xf32>
    %cst_26 = arith.constant 0.000000e+00 : f32
    %34 = vector.broadcast %cst_26 : f32 to vector<32x128xf32>
    %35 = arith.maximumf %33, %34 : vector<32x128xf32>
    %c0_27 = arith.constant 0 : index
    %c0_28 = arith.constant 0 : index
    %36 = vector.load %arg6[%c0_27, %c0_28] : memref<32x1xf32, #tpu.memory_space<vmem>>, vector<32x1xf32>
    %37 = vector.broadcast %36 : vector<32x1xf32> to vector<32x128xf32>
    %38 = arith.mulf %35, %37 : vector<32x128xf32>
    %cst_29 = arith.constant dense<0.000000e+00> : vector<128xf32>
    %39 = vector.multi_reduction <add>, %38, %cst_29 [0] : vector<32x128xf32> to vector<128xf32>
    %40 = vector.shape_cast %39 : vector<128xf32> to vector<1x128xf32>
    %c0_30 = arith.constant 0 : index
    %c0_31 = arith.constant 0 : index
    %41 = vector.load %arg7[%c0_30, %c0_31] : memref<1x1xf32, #tpu.memory_space<vmem>>, vector<1x1xf32>
    %42 = vector.broadcast %41 : vector<1x1xf32> to vector<1x128xf32>
    %43 = arith.addf %40, %42 : vector<1x128xf32>
    %44 = arith.negf %43 : vector<1x128xf32>
    %45 = math.exp %44 : vector<1x128xf32>
    %cst_32 = arith.constant 1.000000e+00 : f32
    %46 = vector.broadcast %cst_32 : f32 to vector<1x128xf32>
    %47 = arith.addf %46, %45 : vector<1x128xf32>
    %48 = arith.divf %46, %47 : vector<1x128xf32>
    %c0_33 = arith.constant 0 : index
    %c0_34 = arith.constant 0 : index
    %49 = vector.load %arg8[%c0_33, %c0_34] : memref<1x128xf32, #tpu.memory_space<vmem>>, vector<1x128xf32>
    tpu.vector_store %arg8[%c0_33, %c0_34], %48 {strides = array<i32>} : memref<1x128xf32, #tpu.memory_space<vmem>>, vector<1x128xf32>,
    return
  }
  func.func @transform_0(%arg0: i32) -> (i32, i32) {
    %c0_i32 = arith.constant 0 : i32
    %c0_i32_0 = arith.constant 0 : i32
    return %c0_i32, %arg0 : i32, i32
  }
  func.func @transform_1(%arg0: i32) -> (i32, i32) {
    %c0_i32 = arith.constant 0 : i32
    %c0_i32_0 = arith.constant 0 : i32
    %c0_i32_1 = arith.constant 0 : i32
    return %c0_i32, %c0_i32_0 : i32, i32
  }
  func.func @transform_2(%arg0: i32) -> (i32, i32) {
    %c0_i32 = arith.constant 0 : i32
    %c0_i32_0 = arith.constant 0 : i32
    %c0_i32_1 = arith.constant 0 : i32
    return %c0_i32, %c0_i32_0 : i32, i32
  }
  func.func @transform_3(%arg0: i32) -> (i32, i32, i32) {
    %c0_i32 = arith.constant 0 : i32
    %c0_i32_0 = arith.constant 0 : i32
    %c0_i32_1 = arith.constant 0 : i32
    %c0_i32_2 = arith.constant 0 : i32
    return %c0_i32, %c0_i32_0, %c0_i32_1 : i32, i32, i32
  }
  func.func @transform_4(%arg0: i32) -> (i32, i32, i32) {
    %c0_i32 = arith.constant 0 : i32
    %c0_i32_0 = arith.constant 0 : i32
    %c0_i32_1 = arith.constant 0 : i32
    %c0_i32_2 = arith.constant 0 : i32
    return %c0_i32, %c0_i32_0, %c0_i32_1 : i32, i32, i32
  }
  func.func @transform_5(%arg0: i32) -> (i32, i32) {
    %c0_i32 = arith.constant 0 : i32
    %c0_i32_0 = arith.constant 0 : i32
    %c0_i32_1 = arith.constant 0 : i32
    return %c0_i32, %c0_i32_0 : i32, i32
  }
  func.func @transform_6(%arg0: i32) -> (i32, i32) {
    %c0_i32 = arith.constant 0 : i32
    %c0_i32_0 = arith.constant 0 : i32
    %c0_i32_1 = arith.constant 0 : i32
    return %c0_i32, %c0_i32_0 : i32, i32
  }
  func.func @transform_7(%arg0: i32) -> (i32, i32) {
    %c0_i32 = arith.constant 0 : i32
    %c0_i32_0 = arith.constant 0 : i32
    return %c0_i32, %arg0 : i32, i32
  }
}

</mosaic_0001>

<bundles_post_ra>
// kernel: tpu_custom_call.1
= control target key start
LH: loop header
LB: loop body
LE: loop exit
PB: predicated region body
PF: predicated region fallthrough
CT: control target
= control target key end

     0   :  { %s1532_s0 = inlined_call_operand.vmem [shape: f32[200,8], index: 0, kind: input, shape index: {}]   ;;  %s1533_s1 = inlined_call_operand.vmem [shape: f32[32,8], index: 1, kind: input, shape index: {}]   ;;  %s1534_s2 = inlined_call_operand.vmem [shape: f32[32,1], index: 2, kind: input, shape index: {}]   ;;  %s1535_s3 = inlined_call_operand.vmem [shape: bf16[3,32,32], index: 3, kind: input, shape index: {}]   ;;  %s1536_s4 = inlined_call_operand.vmem [shape: f32[3,32,1], index: 4, kind: input, shape index: {}]   ;;  %s1537_s5 = inlined_call_operand.vmem [shape: f32[32,1], index: 5, kind: input, shape index: {}]   ;;  %s1538_s6 = inlined_call_operand.<no memory space> [shape: f32[1,1], index: 6, kind: input, shape index: {}]   ;;  %s1539_s7 = inlined_call_operand.hbm [shape: f32[1,200], index: 7, kind: output, shape index: {}]  }
   0x1   :  { %v12_v0 = vstv %s1538_s6 }
   0x2   :  { %13 = vst [vmem:[#allocation2] sm:$0x1] %v12_v0 }
   0x3   :  { %14 = vsyncpa [#allocation4], 0 }
   0x4   :  { %16 = vsyncpa [#allocation4 + $0x1], 0  ;;  %s1277_s26 = smov 0   ;;  %s1279_s27 = smov 0  }
   0x5   :  { %s1281_s28 = smov 0   ;;  %s1283_s29 = smov 0  }
   0x6 LB: > { %s915_s6 = sadd.s32 4294967295, %s1230_s29   ;;  %s916_s30 = sadd.s32 4294967294, %s1230_s29   ;;  %s1230_s29 = sphi %s1283_s29, %s1547_s29   ;;  %s1226_s28 = sphi %s1281_s28, %s1546_s28   ;;  %s1222_s27 = sphi %s1279_s27, %s1545_s27   ;;  %s1218_s26 = sphi %s1277_s26, %s1544_s26  }
   0x7   : > { %s1300_s8 = sadd.s32 1, %s1230_s29   ;;  %s181_s9 = sadd.s32 1, %s1226_s28 }
   0x8   : > { %s178_s10 = ssub.s32 %s1230_s29, %s1300_s8  ;;  %p191_p0 = scmp.ne.s32.totalorder %s1226_s28, %s1222_s27 }
   0x9   : > { %p179_p1 = scmp.eq.s32.totalorder %s178_s10, 0  ;;  %p192_p2 = scmp.eq.s32.totalorder %s915_s6, 1 }
   0xa   : > { %p197_p3 = scmp.ne.s32.totalorder %s1222_s27, %s1218_s26  ;;  %p198_p4 = scmp.eq.s32.totalorder %s916_s30, 1 }
   0xb   : > { %s1310_s11 = scalar_select %p179_p1, %s1226_s28, %s181_s9  }
   0xc   : > { %p1312_p5 = por %p192_p2, %p191_p0  ;;  %p1316_p6 = por %p198_p4, %p197_p3 }
   0xd   : > { %p919_p7 = scmp.ge.s32.totalorder %s1230_s29, 1  ;;  %p251_p8 = scmp.lt.s32.totalorder %s1230_s29, 3 }
   0xf   : > { %p252_p9 = pnand %p919_p7, %p251_p8 }
  0x10   : > { %s1322_s14 = sshll.u32 (!%p252_p9), %s915_s6, 4  ;;  %vm345_vm0 = vcmask (!%p252_p9), 64512   ;;  %v317_v1 = vld [vmem:[%s1533_s1] sm:$0xff] (!%p252_p9)  ;;  %v1232_v2 = vmov (!%p252_p9), 0   ;;  %v323_v4 = vld [vmem:[%s1534_s2 + $0x10] sm:$0xff] (!%p252_p9)  ;;  %v322_v5 = vld [vmem:[%s1534_s2 + $0x8] sm:$0xff] (!%p252_p9) }
  0x11   : > { %255 = sbr.rel (%p252_p9) target bundleno = 1059 (0x423), region = 48  ;;  %p291_p10 = scmp.lt.s32.totalorder (!%p252_p9), %s1322_s14, 24  ;;  %1038 = vmatprep.mubr.msk.f32.mxu0 (!%p252_p9), %vm345_vm0, %v317_v1  ;;  %1156 = vset.pattern.permute.xlu0 (!%p252_p9), %v1232_v2  ;;  %v321_v3 = vld [vmem:[%s1534_s2] sm:$0xff] (!%p252_p9)  ;;  %v324_v6 = vld [vmem:[%s1534_s2 + $0x18] sm:$0xff] (!%p252_p9)  ;;  %vm1349_vm1 = vmpackc.low (!%p252_p9), %vm345_vm0, %vm345_vm0  ;;  %vm531_vm2 = vcmask (!%p252_p9), 261120  }
  0x12   : > { %327 = vperm.xlu0 (!%p252_p9), %1156, %v321_v3   ;;  %1157 = vset.pattern.permute.xlu1 (!%p252_p9), %v1232_v2  ;;  %v497_v8 = vld [vmem:[%s1536_s4] sm:$0xff] (!%p252_p9)  ;;  %v498_v14 = vld [vmem:[%s1536_s4 + $0x8] sm:$0xff] (!%p252_p9)  ;;  %v499_v16 = vld [vmem:[%s1536_s4 + $0x10] sm:$0xff] (!%p252_p9)  ;;  %s284_s22 = sand.u32 (!%p252_p9), 1, %s1222_s27   ;;  %s1233_s15 = smov (!%p252_p9), [#allocation3]  }
  0x13   : > { %337 = vperm.xlu1 (!%p252_p9), %1157, %v323_v4   ;;  %v500_v17 = vld [vmem:[%s1536_s4 + $0x18] sm:$0xff] (!%p252_p9)  ;;  %v950_v20 = vld [vmem:[%s1536_s4 + $0x20] sm:$0xff] (!%p252_p9)  ;;  %v951_v21 = vld [vmem:[%s1536_s4 + $0x28] sm:$0xff] (!%p252_p9)  ;;  %s849_s30 = scalar_lea.sflag (!%p252_p9), [#allocation4], %s284_s22  ;;  %s1172_s16 = sshll.u32 (!%p252_p9), %s1233_s15, 4  ;;  %s1173_s16 = int_to_ptr.vmem [resolvable:$false] %s1172_s16 }
  0x14   : > { %v952_v23 = vld [vmem:[%s1536_s4 + $0x30] sm:$0xff] (!%p252_p9)  ;;  %v953_v24 = vld [vmem:[%s1536_s4 + $0x38] sm:$0xff] (!%p252_p9)  ;;  %v962_v27 = vld [vmem:[%s1536_s4 + $0x40] sm:$0xff] (!%p252_p9)  ;;  %s1174_s17 = scalar_lea.vmem (!%p252_p9), %s1173_s16, 32 }
  0x15   : > { %v963_v29 = vld [vmem:[%s1536_s4 + $0x48] sm:$0xff] (!%p252_p9)  ;;  %v964_v30 = vld [vmem:[%s1536_s4 + $0x50] sm:$0xff] (!%p252_p9)  ;;  %v965_v31 = vld [vmem:[%s1536_s4 + $0x58] sm:$0xff] (!%p252_p9) }
  0x16   : > { %332 = vperm.xlu0 (!%p252_p9), %1156, %v322_v5   ;;  %v793_v34 = vld [vmem:[%s1537_s5] sm:$0xff] (!%p252_p9)  ;;  %v794_v36 = vld [vmem:[%s1537_s5 + $0x8] sm:$0xff] (!%p252_p9)  ;;  %v795_v37 = vld [vmem:[%s1537_s5 + $0x10] sm:$0xff] (!%p252_p9) }
  0x17   : > { %342 = vperm.xlu1 (!%p252_p9), %1157, %v324_v6   ;;  %v796_v38 = vld [vmem:[%s1537_s5 + $0x18] sm:$0xff] (!%p252_p9)  ;;  %v830_v41 = vld [vmem:[#allocation2] sm:$0x1] (!%p252_p9)  ;;  %v318_v49 = vld [vmem:[%s1533_s1 + $0x8] sm:$0xff] (!%p252_p9) }
  0x18   : > { %s292_s21 = scalar_select %p291_p10, %s1322_s14, 24  ;;  %v319_v50 = vld [vmem:[%s1533_s1 + $0x10] sm:$0xff]  ;;  %v320_v51 = vld [vmem:[%s1533_s1 + $0x18] sm:$0xff]  ;;  %v1158_v52 = vld [vmem:[%s1535_s3] sm:$0xff]  }
  0x19   : > { %1048 = vmatprep.mubr.msk.bf16.mxu1 %vm531_vm2, %v1158_v52  ;;  %v1159_v3 = vld [vmem:[%s1535_s3 + $0x8] sm:$0xff]   ;;  %v1160_v4 = vld [vmem:[%s1535_s3 + $0x10] sm:$0xff]  }
  0x1a   : > { %s921_s6 = sshll.u32 %s292_s21, 3  ;;  %503 = vperm.xlu0 %1156, %v497_v8  }
  0x1b   : > { %s1345_s10 = scalar_lea.vmem %s1532_s0, %s921_s6  ;;  %508 = vperm.xlu1 %1157, %v498_v14   ;;  %s1490_s6 = scalar_lea.hbm %s1539_s7, %s1322_s14 }
  0x1c   : > { %v301_v9 = vld [vmem:[%s1345_s10] sm:$0xff]  ;;  %v302_v10 = vld [vmem:[%s1345_s10 + $0x8] sm:$0xff]  ;;  %v303_v11 = vld [vmem:[%s1345_s10 + $0x10] sm:$0xff] }
  0x1d   : > { %v1068_v12 = vpack.c.bf16 %v302_v10, %v301_v9  ;;  %v304_v13 = vld [vmem:[%s1345_s10 + $0x18] sm:$0xff]  ;;  %v305_v18 = vld [vmem:[%s1345_s10 + $0x20] sm:$0xff]  ;;  %v306_v19 = vld [vmem:[%s1345_s10 + $0x28] sm:$0xff] }
  0x1e   : > { %v1074_v15 = vpack.c.bf16 %v304_v13, %v303_v11  ;;  %513 = vperm.xlu0 %1156, %v499_v16   ;;  %v1080_v22 = vpack.c.bf16 %v306_v19, %v305_v18  ;;  %v307_v25 = vld [vmem:[%s1345_s10 + $0x30] sm:$0xff]  ;;  %v308_v26 = vld [vmem:[%s1345_s10 + $0x38] sm:$0xff]  ;;  %v309_v32 = vld [vmem:[%s1345_s10 + $0x40] sm:$0xff] }
  0x1f   : > { %1070 = vmatprep.subr.msk.bf16.mxu0 %vm1349_vm1, %v1068_v12  ;;  %518 = vperm.xlu1 %1157, %v500_v17   ;;  %v1086_v28 = vpack.c.bf16 %v308_v26, %v307_v25  ;;  %v310_v33 = vld [vmem:[%s1345_s10 + $0x48] sm:$0xff]  ;;  %v311_v39 = vld [vmem:[%s1345_s10 + $0x50] sm:$0xff]  ;;  %v312_v40 = vld [vmem:[%s1345_s10 + $0x58] sm:$0xff] }
  0x20   : > { %1073 = vmatpush3.bf16.xpose.msk.msra.mxu0 %vm1349_vm1, %v1068_v12  ;;  %v1092_v35 = vpack.c.bf16 %v310_v33, %v309_v32  ;;  %v1098_v42 = vpack.c.bf16 %v312_v40, %v311_v39  ;;  %v313_v43 = vld [vmem:[%s1345_s10 + $0x60] sm:$0xff]  ;;  %v314_v44 = vld [vmem:[%s1345_s10 + $0x68] sm:$0xff]  ;;  %v315_v46 = vld [vmem:[%s1345_s10 + $0x70] sm:$0xff] }
  0x21   : > { %1076 = vmatprep.subr.msk.bf16.mxu0 %vm1349_vm1, %v1074_v15  ;;  %v1104_v45 = vpack.c.bf16 %v314_v44, %v313_v43  ;;  %v316_v47 = vld [vmem:[%s1345_s10 + $0x78] sm:$0xff]  ;;  %v1163_v43 = vld [vmem:[%s1535_s3 + $0x28] sm:$0xff]   ;;  %s285_s10 = scalar_lea.vmem [#allocation3], %s284_s22 }
  0x22   : > { %605 = vperm.xlu0 %1156, %v950_v20   ;;  %v1110_v48 = vpack.c.bf16 %v316_v47, %v315_v46  ;;  %s861_s23 = sshll.u32 %s285_s10, 4  ;;  %s1492_s23 = int_to_ptr.vmem [resolvable:$true] %s861_s23 }
  0x23   : > { %610 = vperm.xlu1 %1157, %v951_v21   ;;  %s1168_s9 = scalar_lea.vmem %s1492_s23, 16  ;;  %p1175_p0 = scmp.lt.s32.totalorder %s1492_s23, %s1173_s16 }
  0x24   : > { %p1169_p11 = scmp.ne.s32.totalorder %s1492_s23, %s1168_s9  ;;  %p1176_p1 = scmp.lt.s32.totalorder %s1174_s17, %s1168_s9 }
  0x26   : > { %615 = vperm.xlu0 %1156, %v952_v23   ;;  %v1161_v23 = vld [vmem:[%s1535_s3 + $0x18] sm:$0xff]   ;;  %p1170_p12 = pnand %p1169_p11, %p1312_p5  ;;  %p1177_p2 = por %p1176_p1, %p1175_p0 }
  0x27   : > { %620 = vperm.xlu1 %1157, %v953_v24   ;;  %v1162_v24 = vld [vmem:[%s1535_s3 + $0x20] sm:$0xff]  }
  0x28   : > { %1079 = vmatpush3.bf16.xpose.msk.msra.mxu0 %vm1349_vm1, %v1074_v15  ;;  %p1171_p13 = pneg %p1170_p12 }
  0x29   : > { %1082 = vmatprep.subr.msk.bf16.mxu0 %vm1349_vm1, %v1080_v22 }
  0x2a   : > { %706 = vperm.xlu0 %1156, %v962_v27   ;;  %p1178_p3 = pnand %p1177_p2, %p1171_p13 }
  0x2b   : > { %711 = vperm.xlu1 %1157, %v963_v29  }
  0x2e   : > { %716 = vperm.xlu0 %1156, %v964_v30  }
  0x2f   : > { %721 = vperm.xlu1 %1157, %v965_v31  }
  0x30   : > { %1085 = vmatpush3.bf16.xpose.msk.msra.mxu0 %vm1349_vm1, %v1080_v22 }
  0x31   : > { %1088 = vmatprep.subr.msk.bf16.mxu0 %vm1349_vm1, %v1086_v28 }
  0x32   : > { %799 = vperm.xlu0 %1156, %v793_v34  }
  0x33   : > { %804 = vperm.xlu1 %1157, %v794_v36  }
  0x36   : > { %809 = vperm.xlu0 %1156, %v795_v37  }
  0x37   : > { %814 = vperm.xlu1 %1157, %v796_v38  }
  0x38   : > { %1091 = vmatpush3.bf16.xpose.msk.msra.mxu0 %vm1349_vm1, %v1086_v28 }
  0x39   : > { %1094 = vmatprep.subr.msk.bf16.mxu0 %vm1349_vm1, %v1092_v35 }
  0x3a   : > { %833 = vperm.xlu0 %1156, %v830_v41  }
  0x40   : > { %1097 = vmatpush3.bf16.xpose.msk.msra.mxu0 %vm1349_vm1, %v1092_v35 }
  0x41   : > { %1100 = vmatprep.subr.msk.bf16.mxu0 %vm1349_vm1, %v1098_v42 }
  0x48   : > { %1103 = vmatpush3.bf16.xpose.msk.msra.mxu0 %vm1349_vm1, %v1098_v42 }
  0x49   : > { %1106 = vmatprep.subr.msk.bf16.mxu0 %vm1349_vm1, %v1104_v45 }
  0x50   : > { %1109 = vmatpush3.bf16.xpose.msk.msra.mxu0 %vm1349_vm1, %v1104_v45 }
  0x51   : > { %1112 = vmatprep.subr.msk.bf16.mxu0 %vm1349_vm1, %v1110_v48 }
  0x58   : > { %1115 = vmatpush3.bf16.xpose.msk.msra.mxu0 %vm1349_vm1, %v1110_v48 }
  0x5f   : > { %1039 = vmatmul.mubr.msk.f32.vlgmr.msra.gmra.mrb[0].mxu0 %vm345_vm0, %v318_v49 }
  0x60   : > { %1041 = vmatprep.mubr.msk.f32.mxu0 %vm345_vm0, %v319_v50 }
  0x63   : > { %1042 = vmatmul.mubr.msk.f32.gmra.mrb[2].mxu0 %vm345_vm0, %v320_v51 }
  0x91   : > { %v328_v53 = vpop.permute.xlu0 %327 }
  0x92   : > { %v338_v54 = vpop.permute.xlu1 %337 }
  0x95   : > { %v333_v55 = vpop.permute.xlu0 %332 }
  0x96   : > { %v343_v60 = vpop.permute.xlu1 %342 }
  0x99   : > { %v504_v5 = vpop.permute.xlu0 %503 }
  0x9a   : > { %v509_v6 = vpop.permute.xlu1 %508 }
  0x9d   : > { %v514_v7 = vpop.permute.xlu0 %513 }
  0x9e   : > { %v519_v11 = vpop.permute.xlu1 %518 }
  0xa1   : > { %v606_v25 = vpop.permute.xlu0 %605 }
  0xa2   : > { %v611_v26 = vpop.permute.xlu1 %610 }
  0xa5   : > { %v616_v27 = vpop.permute.xlu0 %615 }
  0xa6   : > { %v621_v31 = vpop.permute.xlu1 %620 }
  0xa9   : > { %v707_v44 = vpop.permute.xlu0 %706 }
  0xaa   : > { %v712_v45 = vpop.permute.xlu1 %711 }
  0xad   : > { %v717_v46 = vpop.permute.xlu0 %716 }
  0xae   : > { %v722_v47 = vpop.permute.xlu1 %721 }
 0x132   : > { %v1040_v56 = vpop.f32.mrb[0].mxu0 }
 0x133   : > { %v478_v57 = vadd.f32 %v1040_v56, %v333_v55  ;;  %v472_v58 = vpop.f32.mrb[1].mxu0 }
 0x134   : > { %v473_v59 = vadd.f32 %v472_v58, %v328_v53  ;;  %v800_v53 = vpop.permute.xlu0 %799  ;;  %v805_v58 = vpop.permute.xlu1 %804 }
 0x136   : > { %v1043_v61 = vpop.f32.mrb[2].mxu0  ;;  %v491_v62 = vpack.c.bf16 %v478_v57, %v473_v59 }
 0x137   : > { %v488_v63 = vadd.f32 %v1043_v61, %v343_v60  ;;  %v482_v0 = vpop.f32.mrb[3].mxu0 }
 0x138   : > { %v483_v1 = vadd.f32 %v482_v0, %v338_v54  ;;  %1044 = vmatprep.subr.bf16.mxu1 %v491_v62  ;;  %v810_v0 = vpop.permute.xlu0 %809 }
 0x139   : > { %1045 = vmatpush3.bf16.msra.mxu1 %v491_v62 }
 0x13a   : > { %v492_v2 = vpack.c.bf16 %v488_v63, %v483_v1 }
 0x13c   : > { %1046 = vmatprep.subr.bf16.mxu1 %v492_v2 }
 0x13d   : > { %1047 = vmatpush3.bf16.msra.mxu1 %v492_v2 }
 0x140   : > { %1049 = vmatmul.mubr.msk.bf16.vlgmr.msra.gmra.mrb[0].mxu1 %vm531_vm2, %v1159_v3  ;;  %v815_v3 = vpop.permute.xlu1 %814 }
 0x141   : > { %1056 = vmatprep.mubr.msk.bf16.mxu1 %vm531_vm2, %v1160_v4 }
 0x213   : > { %v1050_v8 = vpop.f32.mrb[0].mxu1 }
 0x214   : > { %v581_v9 = vadd.f32 %v1050_v8, %v514_v7  ;;  %v572_v10 = vpop.f32.mrb[1].mxu1 }
 0x215   : > { %v573_v12 = vadd.f32 %v572_v10, %v504_v5  ;;  %v1051_v13 = vpop.f32.mrb[2].mxu1 }
 0x216   : > { %v584_v14 = vadd.f32 %v1051_v13, %v519_v11  ;;  %v575_v15 = vpop.f32.mrb[3].mxu1  ;;  %v589_v17 = vmax.f32 %v581_v9, 0.0 }
 0x217   : > { %v576_v16 = vadd.f32 %v575_v15, %v509_v6  ;;  %v587_v19 = vmax.f32 %v573_v12, 0.0  ;;  %v836_v6 = vlaneseq }
 0x218   : > { %v590_v18 = vmax.f32 %v584_v14, 0.0  ;;  %v834_v14 = vpop.permute.xlu0 %833 }
 0x219   : > { %v588_v20 = vmax.f32 %v576_v16, 0.0  ;;  %v837_v9 = vshrl.u32 %v836_v6, 7 }
 0x21a   : > { %v592_v21 = vpack.c.bf16 %v590_v18, %v589_v17 }
 0x21b   : > { %v591_v22 = vpack.c.bf16 %v588_v20, %v587_v19  ;;  %v838_v12 = vsub.s32 0, %v837_v9 }
 0x21d   : > { %1052 = vmatprep.subr.bf16.mxu1 %v591_v22  ;;  %v839_v16 = vrot.slane %v834_v14, %v838_v12 }
 0x21e   : > { %1053 = vmatpush3.bf16.msra.mxu1 %v591_v22 }
 0x21f   : > { %1054 = vmatprep.subr.bf16.mxu1 %v592_v21 }
 0x222   : > { %1055 = vmatpush3.bf16.msra.mxu1 %v592_v21 }
 0x225   : > { %1057 = vmatmul.mubr.msk.bf16.vlgmr.msra.gmra.mrb[4].mxu1 %vm531_vm2, %v1161_v23 }
 0x226   : > { %1064 = vmatprep.mubr.msk.bf16.mxu1 %vm531_vm2, %v1162_v24 }
 0x2f8   : > { %v1058_v28 = vpop.f32.mrb[4].mxu1 }
 0x2f9   : > { %v682_v29 = vadd.f32 %v1058_v28, %v616_v27  ;;  %v673_v30 = vpop.f32.mrb[5].mxu1 }
 0x2fa   : > { %v674_v32 = vadd.f32 %v673_v30, %v606_v25  ;;  %v1059_v33 = vpop.f32.mrb[6].mxu1 }
 0x2fb   : > { %v685_v34 = vadd.f32 %v1059_v33, %v621_v31  ;;  %v676_v35 = vpop.f32.mrb[7].mxu1  ;;  %v690_v37 = vmax.f32 %v682_v29, 0.0 }
 0x2fc   : > { %v677_v36 = vadd.f32 %v676_v35, %v611_v26  ;;  %v688_v39 = vmax.f32 %v674_v32, 0.0 }
 0x2fd   : > { %v691_v38 = vmax.f32 %v685_v34, 0.0 }
 0x2fe   : > { %v689_v40 = vmax.f32 %v677_v36, 0.0 }
 0x2ff   : > { %v693_v41 = vpack.c.bf16 %v691_v38, %v690_v37 }
 0x300   : > { %v692_v42 = vpack.c.bf16 %v689_v40, %v688_v39 }
 0x302   : > { %1060 = vmatprep.subr.bf16.mxu1 %v692_v42 }
 0x303   : > { %1061 = vmatpush3.bf16.msra.mxu1 %v692_v42 }
 0x304   : > { %1062 = vmatprep.subr.bf16.mxu1 %v693_v41 }
 0x307   : > { %1063 = vmatpush3.bf16.msra.mxu1 %v693_v41 }
 0x30a   : > { %1065 = vmatmul.mubr.msk.bf16.vlgmr.msra.gmra.mrb[8].mxu1 %vm531_vm2, %v1163_v43 }
 0x3dd   : > { %v1066_v48 = vpop.f32.mrb[8].mxu1 }
 0x3de   : > { %v774_v49 = vpop.f32.mrb[9].mxu1  ;;  %v783_v50 = vadd.f32 %v1066_v48, %v717_v46 }
 0x3df   : > { %v775_v51 = vadd.f32 %v774_v49, %v707_v44  ;;  %v1067_v52 = vpop.f32.mrb[10].mxu1 }
 0x3e0   : > { %v777_v54 = vpop.f32.mrb[11].mxu1  ;;  %v786_v56 = vadd.f32 %v1067_v52, %v722_v47  ;;  %v791_v59 = vmax.f32 %v783_v50, 0.0 }
 0x3e1   : > { %v789_v55 = vmax.f32 %v775_v51, 0.0  ;;  %v778_v57 = vadd.f32 %v777_v54, %v712_v45 }
 0x3e2   : > { %v792_v62 = vmax.f32 %v786_v56, 0.0  ;;  %v819_v1 = vmul.f32 %v810_v0, %v791_v59 }
 0x3e3   : > { %v790_v60 = vmax.f32 %v778_v57, 0.0  ;;  %v817_v61 = vmul.f32 %v800_v53, %v789_v55 }
 0x3e4   : > { %v820_v4 = vmul.f32 %v815_v3, %v792_v62 }
 0x3e5   : > { %v818_v63 = vmul.f32 %v805_v58, %v790_v60 }
 0x3e7   : > { %v821_v2 = vadd.f32 %v818_v63, %v817_v61 }
 0x3e9   : > { %v822_v5 = vadd.f32 %v821_v2, %v819_v1 }
 0x3eb   : > { %v823_v7 = vadd.f32 %v822_v5, %v820_v4 }
 0x3ed   : > { %v824_v8 = vrot.slane %v823_v7, 4 }
 0x3ef   : > { %v825_v10 = vadd.f32 %v824_v8, %v823_v7 }
 0x3f1   : > { %v826_v11 = vrot.slane %v825_v10, 2 }
 0x3f3   : > { %v827_v13 = vadd.f32 %v826_v11, %v825_v10 }
 0x3f5   : > { %v828_v15 = vrot.slane %v827_v13, 1 }
 0x3f7   : > { %v829_v17 = vadd.f32 %v828_v15, %v827_v13 }
 0x3f9   : > { %v840_v18 = vadd.f32 %v839_v16, %v829_v17 }
 0x3fb   : > { %v970_v19 = vmul.f32 -1.442695, %v840_v18 }
 0x3fd   : > { %1164 = vpow2.f32 %v970_v19 }
 0x407   : > { %v1165_v20 = vpop.eup %1164 }
 0x408   : > { %v844_v21 = vadd.f32 1.0, %v1165_v20 }
 0x40a   : > { %1166 = vrcp.f32 %v844_v21 }
 0x414   : > { %v1167_v22 = vpop.eup %1166 }
 0x415   : > { %847 = vst [vmem:[%s285_s10] sm:$0x1] %v1167_v22 }
 0x416   : > { %1181 = shalt.err (!%p1178_p3)
}
 0x417   : > { %s1182_s14 = scalar_lea.hbm %s1490_s6, 16  ;;  %s1186_s20 = scalar_lea.hbm %s1539_s7, 32 }
 0x418   : > { %p1183_p4 = scmp.ne.s32.totalorder %s1490_s6, %s1182_s14  ;;  %p1187_p9 = scmp.lt.u32.totalorder %s1490_s6, %s1539_s7 }
 0x419   : > { %p1188_p10 = scmp.lt.u32.totalorder %s1186_s20, %s1182_s14  ;;  %p1190_p12 = scmp.lt.u32.totalorder %s1182_s14, %s1490_s6 }
 0x41a   : > { %p1184_p7 = pnand %p1183_p4, %p1312_p5 }
 0x41b   : > { %p1189_p11 = por %p1188_p10, %p1187_p9 }
 0x41c   : > { %p1185_p8 = pneg %p1184_p7 }
 0x41d   : > { %p1191_p13 = por %p1190_p12, %p1189_p11 }
 0x41f   : > { %p1192_p0 = pnand %p1191_p13, %p1185_p8 }
 0x421   : > { %1195 = shalt.err (!%p1192_p0)
}
 0x422   : > { %1116 = dma.vmem_to_hbm [thread:$0]  (%p1312_p5), %s1492_s23, 16, %s1490_s6, %s849_s30  }
 0x423 PF: > { %p1122_p1 = scmp.ge.s32.totalorder %s1230_s29, 2  ;;  %s873_s10 = sand.u32 1, %s1218_s26  }
 0x424   : > { %s874_s24 = scalar_lea.sflag [#allocation4], %s873_s10 }
 0x425   : > { %p1119_p2 = pnand %p1122_p1, %p1316_p6 }
 0x427   : > { %1213 = dma.done.wait (!%p1119_p2), %s874_s24, 16  }
 0x428   : > { %1215 = vsyncadd (!%p1119_p2), %s874_s24, 4294967280  ;;  %p19_p3 = scmp.ge.s32.totalorder %s1300_s8, 4   ;;  %s1544_s26 = smov %s1222_s27 }
 0x429   : > { %s1545_s27 = smov %s1226_s28  ;;  %s1546_s28 = smov %s1310_s11 }
 0x42a   : > { %s1547_s29 = smov %s1300_s8  ;;  %21 = sbr.rel (!%p19_p3) target bundleno = 6 (0x6), region = 87 }
 0x431   :  { %878 = vsyncpa [#allocation4], 1 }
 0x432   :  { %880 = vsyncpa [#allocation4 + $0x1], 1 }

// kernel: tpu_custom_call.1
= control target key start
LH: loop header
LB: loop body
LE: loop exit
PB: predicated region body
PF: predicated region fallthrough
CT: control target
= control target key end

     0   :  { %s1279_s0 = inlined_call_operand.vmem [shape: f32[8,200], index: 0, kind: input, shape index: {}]   ;;  %s1280_s1 = inlined_call_operand.vmem [shape: f32[32,8], index: 1, kind: input, shape index: {}]   ;;  %s1281_s2 = inlined_call_operand.vmem [shape: f32[32,1], index: 2, kind: input, shape index: {}]   ;;  %s1282_s3 = inlined_call_operand.vmem [shape: bf16[3,32,32], index: 3, kind: input, shape index: {}]   ;;  %s1283_s4 = inlined_call_operand.vmem [shape: f32[3,32,1], index: 4, kind: input, shape index: {}]   ;;  %s1284_s5 = inlined_call_operand.vmem [shape: f32[32,1], index: 5, kind: input, shape index: {}]   ;;  %s1285_s6 = inlined_call_operand.<no memory space> [shape: f32[1,1], index: 6, kind: input, shape index: {}]   ;;  %s1286_s7 = inlined_call_operand.hbm [shape: f32[1,200], index: 7, kind: output, shape index: {}]  }
   0x1   :  { %v12_v0 = vstv %s1285_s6 }
   0x2   :  { %13 = vst [vmem:[#allocation2] sm:$0x1] %v12_v0 }
   0x3   :  { %14 = vsyncpa [#allocation4], 0 }
   0x4   :  { %16 = vsyncpa [#allocation4 + $0x1], 0  ;;  %s1079_s26 = smov 0   ;;  %s1081_s27 = smov 0  }
   0x5   :  { %s1083_s28 = smov 0   ;;  %s1085_s29 = smov 0  }
   0x6 LB: > { %s1100_s6 = sadd.s32 4294967295, %s1032_s29   ;;  %s828_s30 = sadd.s32 4294967294, %s1032_s29   ;;  %s1032_s29 = sphi %s1085_s29, %s1292_s29   ;;  %s1028_s28 = sphi %s1083_s28, %s1291_s28   ;;  %s1024_s27 = sphi %s1081_s27, %s1290_s27   ;;  %s1020_s26 = sphi %s1079_s26, %s1289_s26  }
   0x7   : > { %s1104_s8 = sadd.s32 1, %s1032_s29   ;;  %s181_s9 = sadd.s32 1, %s1028_s28 }
   0x8   : > { %s178_s10 = ssub.s32 %s1032_s29, %s1104_s8  ;;  %p191_p0 = scmp.ne.s32.totalorder %s1028_s28, %s1024_s27 }
   0x9   : > { %p179_p1 = scmp.eq.s32.totalorder %s178_s10, 0  ;;  %p192_p2 = scmp.eq.s32.totalorder %s1100_s6, 1 }
   0xa   : > { %p197_p3 = scmp.ne.s32.totalorder %s1024_s27, %s1020_s26  ;;  %p198_p4 = scmp.eq.s32.totalorder %s828_s30, 1 }
   0xb   : > { %s1115_s11 = scalar_select %p179_p1, %s1028_s28, %s181_s9  }
   0xc   : > { %p1117_p5 = por %p192_p2, %p191_p0  ;;  %p1121_p6 = por %p198_p4, %p197_p3 }
   0xd   : > { %p831_p7 = scmp.ge.s32.totalorder %s1032_s29, 1  ;;  %p241_p8 = scmp.lt.s32.totalorder %s1032_s29, 3 }
   0xf   : > { %p242_p9 = pnand %p831_p7, %p241_p8 }
  0x10   : > { %p271_p10 = scmp.lt.s32.totalorder (!%p242_p9), %s1100_s6, 1  ;;  %v277_v1 = vld [vmem:[%s1280_s1] sm:$0xff] (!%p242_p9)  ;;  %vm305_vm0 = vcmask (!%p242_p9), 64512   ;;  %v1034_v2 = vmov (!%p242_p9), 0   ;;  %v283_v4 = vld [vmem:[%s1281_s2 + $0x10] sm:$0xff] (!%p242_p9)  ;;  %v282_v5 = vld [vmem:[%s1281_s2 + $0x8] sm:$0xff] (!%p242_p9) }
  0x11   : > { %245 = sbr.rel (%p242_p9) target bundleno = 995 (0x3e3), region = 48  ;;  %888 = vmatprep.mubr.msk.f32.mxu0 (!%p242_p9), %vm305_vm0, %v277_v1  ;;  %958 = vset.pattern.permute.xlu0 (!%p242_p9), %v1034_v2  ;;  %v281_v3 = vld [vmem:[%s1281_s2] sm:$0xff] (!%p242_p9)  ;;  %v284_v6 = vld [vmem:[%s1281_s2 + $0x18] sm:$0xff] (!%p242_p9)  ;;  %v278_v8 = vld [vmem:[%s1280_s1 + $0x8] sm:$0xff] (!%p242_p9)  ;;  %vm443_vm1 = vcmask (!%p242_p9), 261120   ;;  %s269_s19 = sand.u32 (!%p242_p9), 1, %s1024_s27  }
  0x12   : > { %287 = vperm.xlu0 (!%p242_p9), %958, %v281_v3   ;;  %959 = vset.pattern.permute.xlu1 (!%p242_p9), %v1034_v2  ;;  %v279_v9 = vld [vmem:[%s1280_s1 + $0x10] sm:$0xff] (!%p242_p9)  ;;  %v409_v10 = vld [vmem:[%s1283_s4] sm:$0xff] (!%p242_p9)  ;;  %v280_v11 = vld [vmem:[%s1280_s1 + $0x18] sm:$0xff] (!%p242_p9)  ;;  %s866_s20 = sshll.u32 (!%p242_p9), %s1100_s6, 4  ;;  %s270_s21 = scalar_lea.vmem (!%p242_p9), [#allocation3], %s269_s19 }
  0x13   : > { %297 = vperm.xlu1 (!%p242_p9), %959, %v283_v4   ;;  %v410_v12 = vld [vmem:[%s1283_s4 + $0x8] sm:$0xff] (!%p242_p9)  ;;  %v411_v13 = vld [vmem:[%s1283_s4 + $0x10] sm:$0xff] (!%p242_p9)  ;;  %v412_v14 = vld [vmem:[%s1283_s4 + $0x18] sm:$0xff] (!%p242_p9)  ;;  %s773_s22 = sshll.u32 (!%p242_p9), %s270_s21, 4  ;;  %s1237_s25 = scalar_lea.hbm (!%p242_p9), %s1286_s7, %s866_s20  ;;  %s1239_s22 = int_to_ptr.vmem [resolvable:$true] %s773_s22 }
  0x14   : > { %v845_v15 = vld [vmem:[%s1283_s4 + $0x20] sm:$0xff] (!%p242_p9)  ;;  %v846_v16 = vld [vmem:[%s1283_s4 + $0x28] sm:$0xff] (!%p242_p9)  ;;  %v847_v17 = vld [vmem:[%s1283_s4 + $0x30] sm:$0xff] (!%p242_p9)  ;;  %s761_s30 = scalar_lea.sflag (!%p242_p9), [#allocation4], %s269_s19  ;;  %s970_s9 = scalar_lea.vmem (!%p242_p9), %s1239_s22, 16 }
  0x15   : > { %v848_v18 = vld [vmem:[%s1283_s4 + $0x38] sm:$0xff] (!%p242_p9)  ;;  %v857_v19 = vld [vmem:[%s1283_s4 + $0x40] sm:$0xff] (!%p242_p9)  ;;  %v858_v20 = vld [vmem:[%s1283_s4 + $0x48] sm:$0xff] (!%p242_p9)  ;;  %p971_p11 = scmp.ne.s32.totalorder (!%p242_p9), %s1239_s22, %s970_s9 }
  0x16   : > { %292 = vperm.xlu0 (!%p242_p9), %958, %v282_v5   ;;  %v859_v21 = vld [vmem:[%s1283_s4 + $0x50] sm:$0xff] (!%p242_p9)  ;;  %v860_v22 = vld [vmem:[%s1283_s4 + $0x58] sm:$0xff] (!%p242_p9)  ;;  %v705_v23 = vld [vmem:[%s1284_s5] sm:$0xff] (!%p242_p9) }
  0x17   : > { %302 = vperm.xlu1 (!%p242_p9), %959, %v284_v6   ;;  %v706_v24 = vld [vmem:[%s1284_s5 + $0x8] sm:$0xff] (!%p242_p9)  ;;  %v707_v25 = vld [vmem:[%s1284_s5 + $0x10] sm:$0xff] (!%p242_p9)  ;;  %v708_v26 = vld [vmem:[%s1284_s5 + $0x18] sm:$0xff] (!%p242_p9)  ;;  %p972_p12 = pnand (!%p242_p9), %p971_p11, %p1117_p5 }
  0x18   : > { %s272_s18 = scalar_select %p271_p10, %s1100_s6, 1  ;;  %v742_v27 = vld [vmem:[#allocation2] sm:$0x1]  ;;  %v961_v43 = vld [vmem:[%s1282_s3 + $0x8] sm:$0xff]   ;;  %v962_v44 = vld [vmem:[%s1282_s3 + $0x10] sm:$0xff]  }
  0x19   : > { %v960_v28 = vld [vmem:[%s1282_s3] sm:$0xff]   ;;  %v963_v63 = vld [vmem:[%s1282_s3 + $0x18] sm:$0xff]   ;;  %p973_p13 = pneg %p972_p12  ;;  %s1035_s6 = smov [#allocation3]  }
  0x1a   : > { %s832_s23 = sshll.u32 %s272_s18, 3  ;;  %415 = vperm.xlu0 %958, %v409_v10   ;;  %898 = vmatprep.mubr.msk.bf16.mxu1 %vm443_vm1, %v960_v28  ;;  %v964_v0 = vld [vmem:[%s1282_s3 + $0x20] sm:$0xff]  }
  0x1b   : > { %s274_s10 = scalar_lea.vmem %s1279_s0, %s832_s23  ;;  %420 = vperm.xlu1 %959, %v410_v12  }
  0x1c   : > { %v276_v7 = vld [vmem:[%s274_s10] sm:$0xff]  ;;  %s974_s10 = sshll.u32 %s1035_s6, 4  ;;  %s975_s10 = int_to_ptr.vmem [resolvable:$false] %s974_s10 }
  0x1d   : > { %886 = vmatprep.subr.mxu0 %v276_v7  ;;  %s976_s14 = scalar_lea.vmem %s975_s10, 32  ;;  %p977_p0 = scmp.lt.s32.totalorder %s1239_s22, %s975_s10 }
  0x1e   : > { %887 = vmatpush3.msra.mxu0 %v276_v7  ;;  %425 = vperm.xlu0 %958, %v411_v13   ;;  %p978_p1 = scmp.lt.s32.totalorder %s976_s14, %s970_s9 }
  0x1f   : > { %889 = vmatmul.mubr.msk.f32.vlgmr.msra.gmra.mrb[0].mxu0 %vm305_vm0, %v278_v8  ;;  %430 = vperm.xlu1 %959, %v412_v14  }
  0x20   : > { %891 = vmatprep.mubr.msk.f32.mxu0 %vm305_vm0, %v279_v9  ;;  %p979_p2 = por %p978_p1, %p977_p0 }
  0x22   : > { %517 = vperm.xlu0 %958, %v845_v15   ;;  %p980_p3 = pnand %p979_p2, %p973_p13 }
  0x23   : > { %892 = vmatmul.mubr.msk.f32.gmra.mrb[2].mxu0 %vm305_vm0, %v280_v11  ;;  %522 = vperm.xlu1 %959, %v846_v16  }
  0x24   : > { %906 = vmatprep.mubr.msk.bf16.mxu0 %vm443_vm1, %v962_v44 }
  0x26   : > { %527 = vperm.xlu0 %958, %v847_v17  }
  0x27   : > { %532 = vperm.xlu1 %959, %v848_v18  }
  0x2a   : > { %618 = vperm.xlu0 %958, %v857_v19   ;;  %v965_v19 = vld [vmem:[%s1282_s3 + $0x28] sm:$0xff]  }
  0x2b   : > { %623 = vperm.xlu1 %959, %v858_v20  }
  0x2e   : > { %628 = vperm.xlu0 %958, %v859_v21  }
  0x2f   : > { %633 = vperm.xlu1 %959, %v860_v22  }
  0x32   : > { %711 = vperm.xlu0 %958, %v705_v23  }
  0x33   : > { %716 = vperm.xlu1 %959, %v706_v24  }
  0x36   : > { %721 = vperm.xlu0 %958, %v707_v25  }
  0x37   : > { %726 = vperm.xlu1 %959, %v708_v26  }
  0x3a   : > { %745 = vperm.xlu0 %958, %v742_v27  }
  0x91   : > { %v288_v29 = vpop.permute.xlu0 %287 }
  0x92   : > { %v298_v30 = vpop.permute.xlu1 %297 }
  0x95   : > { %v293_v31 = vpop.permute.xlu0 %292 }
  0x96   : > { %v303_v36 = vpop.permute.xlu1 %302 }
  0x99   : > { %v416_v45 = vpop.permute.xlu0 %415 }
  0x9a   : > { %v421_v46 = vpop.permute.xlu1 %420 }
  0x9d   : > { %v426_v47 = vpop.permute.xlu0 %425 }
  0x9e   : > { %v431_v51 = vpop.permute.xlu1 %430 }
  0xa1   : > { %v518_v1 = vpop.permute.xlu0 %517 }
  0xa2   : > { %v523_v2 = vpop.permute.xlu1 %522 }
  0xa5   : > { %v528_v3 = vpop.permute.xlu0 %527 }
  0xa6   : > { %v533_v7 = vpop.permute.xlu1 %532 }
  0xa9   : > { %v619_v20 = vpop.permute.xlu0 %618 }
  0xaa   : > { %v624_v21 = vpop.permute.xlu1 %623 }
  0xad   : > { %v629_v22 = vpop.permute.xlu0 %628 }
  0xae   : > { %v634_v23 = vpop.permute.xlu1 %633 }
  0xf2   : > { %v890_v32 = vpop.f32.mrb[0].mxu0 }
  0xf3   : > { %v390_v33 = vadd.f32 %v890_v32, %v293_v31  ;;  %v384_v34 = vpop.f32.mrb[1].mxu0 }
  0xf4   : > { %v385_v35 = vadd.f32 %v384_v34, %v288_v29  ;;  %v712_v29 = vpop.permute.xlu0 %711  ;;  %v717_v34 = vpop.permute.xlu1 %716 }
  0xf6   : > { %v893_v37 = vpop.f32.mrb[2].mxu0  ;;  %v403_v38 = vpack.c.bf16 %v390_v33, %v385_v35 }
  0xf7   : > { %v400_v39 = vadd.f32 %v893_v37, %v303_v36  ;;  %v394_v40 = vpop.f32.mrb[3].mxu0 }
  0xf8   : > { %v395_v41 = vadd.f32 %v394_v40, %v298_v30  ;;  %894 = vmatprep.subr.bf16.mxu1 %v403_v38  ;;  %v722_v40 = vpop.permute.xlu0 %721 }
  0xf9   : > { %895 = vmatpush3.bf16.msra.mxu1 %v403_v38 }
  0xfa   : > { %v404_v42 = vpack.c.bf16 %v400_v39, %v395_v41 }
  0xfc   : > { %896 = vmatprep.subr.bf16.mxu1 %v404_v42 }
  0xfd   : > { %897 = vmatpush3.bf16.msra.mxu1 %v404_v42 }
 0x100   : > { %899 = vmatmul.mubr.msk.bf16.vlgmr.msra.gmra.mrb[0].mxu1 %vm443_vm1, %v961_v43  ;;  %v727_v43 = vpop.permute.xlu1 %726 }
 0x101   : > { %914 = vmatprep.mubr.msk.bf16.mxu1 %vm443_vm1, %v964_v0 }
 0x1d3   : > { %v900_v48 = vpop.f32.mrb[0].mxu1 }
 0x1d4   : > { %v493_v49 = vadd.f32 %v900_v48, %v426_v47  ;;  %v484_v50 = vpop.f32.mrb[1].mxu1 }
 0x1d5   : > { %v485_v52 = vadd.f32 %v484_v50, %v416_v45  ;;  %v901_v53 = vpop.f32.mrb[2].mxu1 }
 0x1d6   : > { %v496_v54 = vadd.f32 %v901_v53, %v431_v51  ;;  %v487_v55 = vpop.f32.mrb[3].mxu1  ;;  %v501_v57 = vmax.f32 %v493_v49, 0.0 }
 0x1d7   : > { %v488_v56 = vadd.f32 %v487_v55, %v421_v46  ;;  %v499_v59 = vmax.f32 %v485_v52, 0.0  ;;  %v748_v46 = vlaneseq }
 0x1d8   : > { %v502_v58 = vmax.f32 %v496_v54, 0.0  ;;  %v746_v54 = vpop.permute.xlu0 %745 }
 0x1d9   : > { %v500_v60 = vmax.f32 %v488_v56, 0.0  ;;  %v749_v49 = vshrl.u32 %v748_v46, 7 }
 0x1da   : > { %v504_v61 = vpack.c.bf16 %v502_v58, %v501_v57 }
 0x1db   : > { %v503_v62 = vpack.c.bf16 %v500_v60, %v499_v59  ;;  %v750_v52 = vsub.s32 0, %v749_v49 }
 0x1dd   : > { %902 = vmatprep.subr.bf16.mxu0 %v503_v62  ;;  %v751_v56 = vrot.slane %v746_v54, %v750_v52 }
 0x1de   : > { %903 = vmatpush3.bf16.msra.mxu0 %v503_v62 }
 0x1df   : > { %904 = vmatprep.subr.bf16.mxu0 %v504_v61 }
 0x1e2   : > { %905 = vmatpush3.bf16.msra.mxu0 %v504_v61 }
 0x1e5   : > { %907 = vmatmul.mubr.msk.bf16.vlgmr.msra.gmra.mrb[4].mxu0 %vm443_vm1, %v963_v63 }
 0x2b8   : > { %v908_v4 = vpop.f32.mrb[4].mxu0 }
 0x2b9   : > { %v594_v5 = vadd.f32 %v908_v4, %v528_v3  ;;  %v585_v6 = vpop.f32.mrb[5].mxu0 }
 0x2ba   : > { %v586_v8 = vadd.f32 %v585_v6, %v518_v1  ;;  %v909_v9 = vpop.f32.mrb[6].mxu0 }
 0x2bb   : > { %v597_v10 = vadd.f32 %v909_v9, %v533_v7  ;;  %v588_v11 = vpop.f32.mrb[7].mxu0  ;;  %v602_v13 = vmax.f32 %v594_v5, 0.0 }
 0x2bc   : > { %v589_v12 = vadd.f32 %v588_v11, %v523_v2  ;;  %v600_v15 = vmax.f32 %v586_v8, 0.0 }
 0x2bd   : > { %v603_v14 = vmax.f32 %v597_v10, 0.0 }
 0x2be   : > { %v601_v16 = vmax.f32 %v589_v12, 0.0 }
 0x2bf   : > { %v605_v17 = vpack.c.bf16 %v603_v14, %v602_v13 }
 0x2c0   : > { %v604_v18 = vpack.c.bf16 %v601_v16, %v600_v15 }
 0x2c2   : > { %910 = vmatprep.subr.bf16.mxu1 %v604_v18 }
 0x2c3   : > { %911 = vmatpush3.bf16.msra.mxu1 %v604_v18 }
 0x2c4   : > { %912 = vmatprep.subr.bf16.mxu1 %v605_v17 }
 0x2c7   : > { %913 = vmatpush3.bf16.msra.mxu1 %v605_v17 }
 0x2ca   : > { %915 = vmatmul.mubr.msk.bf16.vlgmr.msra.gmra.mrb[4].mxu1 %vm443_vm1, %v965_v19 }
 0x39d   : > { %v916_v24 = vpop.f32.mrb[4].mxu1 }
 0x39e   : > { %v686_v25 = vpop.f32.mrb[5].mxu1  ;;  %v695_v26 = vadd.f32 %v916_v24, %v629_v22 }
 0x39f   : > { %v687_v27 = vadd.f32 %v686_v25, %v619_v20  ;;  %v917_v28 = vpop.f32.mrb[6].mxu1 }
 0x3a0   : > { %v689_v30 = vpop.f32.mrb[7].mxu1  ;;  %v698_v32 = vadd.f32 %v917_v28, %v634_v23  ;;  %v703_v35 = vmax.f32 %v695_v26, 0.0 }
 0x3a1   : > { %v701_v31 = vmax.f32 %v687_v27, 0.0  ;;  %v690_v33 = vadd.f32 %v689_v30, %v624_v21 }
 0x3a2   : > { %v704_v38 = vmax.f32 %v698_v32, 0.0  ;;  %v731_v41 = vmul.f32 %v722_v40, %v703_v35 }
 0x3a3   : > { %v702_v36 = vmax.f32 %v690_v33, 0.0  ;;  %v729_v37 = vmul.f32 %v712_v29, %v701_v31 }
 0x3a4   : > { %v732_v44 = vmul.f32 %v727_v43, %v704_v38 }
 0x3a5   : > { %v730_v39 = vmul.f32 %v717_v34, %v702_v36 }
 0x3a7   : > { %v733_v42 = vadd.f32 %v730_v39, %v729_v37 }
 0x3a9   : > { %v734_v45 = vadd.f32 %v733_v42, %v731_v41 }
 0x3ab   : > { %v735_v47 = vadd.f32 %v734_v45, %v732_v44 }
 0x3ad   : > { %v736_v48 = vrot.slane %v735_v47, 4 }
 0x3af   : > { %v737_v50 = vadd.f32 %v736_v48, %v735_v47 }
 0x3b1   : > { %v738_v51 = vrot.slane %v737_v50, 2 }
 0x3b3   : > { %v739_v53 = vadd.f32 %v738_v51, %v737_v50 }
 0x3b5   : > { %v740_v55 = vrot.slane %v739_v53, 1 }
 0x3b7   : > { %v741_v57 = vadd.f32 %v740_v55, %v739_v53 }
 0x3b9   : > { %v752_v58 = vadd.f32 %v751_v56, %v741_v57 }
 0x3bb   : > { %v865_v59 = vmul.f32 -1.442695, %v752_v58 }
 0x3bd   : > { %966 = vpow2.f32 %v865_v59 }
 0x3c7   : > { %v967_v60 = vpop.eup %966 }
 0x3c8   : > { %v756_v61 = vadd.f32 1.0, %v967_v60 }
 0x3ca   : > { %968 = vrcp.f32 %v756_v61 }
 0x3d4   : > { %v969_v62 = vpop.eup %968 }
 0x3d5   : > { %759 = vst [vmem:[%s270_s21] sm:$0x1] %v969_v62 }
 0x3d6   : > { %983 = shalt.err (!%p980_p3)
}
 0x3d7   : > { %s984_s15 = scalar_lea.hbm %s1237_s25, 16  ;;  %s988_s18 = scalar_lea.hbm %s1286_s7, 32 }
 0x3d8   : > { %p985_p4 = scmp.ne.s32.totalorder %s1237_s25, %s984_s15  ;;  %p989_p9 = scmp.lt.u32.totalorder %s1237_s25, %s1286_s7 }
 0x3d9   : > { %p990_p10 = scmp.lt.u32.totalorder %s988_s18, %s984_s15  ;;  %p992_p12 = scmp.lt.u32.totalorder %s984_s15, %s1237_s25 }
 0x3da   : > { %p986_p7 = pnand %p985_p4, %p1117_p5 }
 0x3db   : > { %p991_p11 = por %p990_p10, %p989_p9 }
 0x3dc   : > { %p987_p8 = pneg %p986_p7 }
 0x3dd   : > { %p993_p13 = por %p992_p12, %p991_p11 }
 0x3df   : > { %p994_p0 = pnand %p993_p13, %p987_p8 }
 0x3e1   : > { %997 = shalt.err (!%p994_p0)
}
 0x3e2   : > { %918 = dma.vmem_to_hbm [thread:$0]  (%p1117_p5), %s1239_s22, 16, %s1237_s25, %s761_s30  }
 0x3e3 PF: > { %p924_p1 = scmp.ge.s32.totalorder %s1032_s29, 2  ;;  %s785_s21 = sand.u32 1, %s1020_s26  }
 0x3e4   : > { %s786_s23 = scalar_lea.sflag [#allocation4], %s785_s21 }
 0x3e5   : > { %p921_p2 = pnand %p924_p1, %p1121_p6 }
 0x3e7   : > { %1015 = dma.done.wait (!%p921_p2), %s786_s23, 16  }
 0x3e8   : > { %1017 = vsyncadd (!%p921_p2), %s786_s23, 4294967280  ;;  %p19_p3 = scmp.ge.s32.totalorder %s1104_s8, 4   ;;  %s1289_s26 = smov %s1024_s27 }
 0x3e9   : > { %s1290_s27 = smov %s1028_s28  ;;  %s1291_s28 = smov %s1115_s11 }
 0x3ea   : > { %s1292_s29 = smov %s1104_s8  ;;  %21 = sbr.rel (!%p19_p3) target bundleno = 6 (0x6), region = 87 }
 0x3f1   :  { %790 = vsyncpa [#allocation4], 1 }
 0x3f2   :  { %792 = vsyncpa [#allocation4 + $0x1], 1 }

</bundles_post_ra>
